<compile_context>
chip_gen: v5e
topology: v5e:2x2
jax: 0.10.0
libtpu: 0.0.40
codegen_flags: <defaults>
</compile_context>

<pallas_src>
import math

import jax
import jax.numpy as jnp
from jax.experimental import pallas as pl
from jax.experimental.pallas import tpu as pltpu


def _round_up(x: int, m: int) -> int:
    return ((x + m - 1) // m) * m


def _make_glu_kernel(activation_fn):
    """activation_fn: callable applied to the activation branch (Identity by default)."""

    def glu_kernel(x_ref, wa_ref, wg_ref, ba_ref, bg_ref,
                   out_ref, gate_ref, acc_a, acc_g):
        k = pl.program_id(2)

        @pl.when(k == 0)
        def _():
            acc_a[...] = jnp.zeros_like(acc_a)
            acc_g[...] = jnp.zeros_like(acc_g)

        x = x_ref[...]
        acc_a[...] += jnp.dot(x, wa_ref[...], preferred_element_type=jnp.float32)
        acc_g[...] += jnp.dot(x, wg_ref[...], preferred_element_type=jnp.float32)

        @pl.when(k == pl.num_programs(2) - 1)
        def _():
            a = acc_a[...] + ba_ref[...].astype(jnp.float32)     # (tm, tn) + (1, tn)
            a = activation_fn(a)
            g = jax.nn.sigmoid(acc_g[...] + bg_ref[...].astype(jnp.float32))
            gate_ref[...] = g.astype(gate_ref.dtype)
            out_ref[...] = (a * g).astype(out_ref.dtype)

    return glu_kernel


def glu_forward(x, wa, ba, wg, bg, *, activation_fn=None,
                tile_m=256, tile_n=512, tile_k=512):
    """Fused GLU forward.

    x:        (..., input_size)
    wa, wg:   (hidden, input_size)   -- torch nn.Linear weight layout
    ba, bg:   (hidden,)
    Returns (output, gate) with shape (..., hidden).
    """
    # TODO(synk): nn.Dropout is stochastic train-time only; inference (p=None/eval) is identity.
    if activation_fn is None:
        activation_fn = lambda t: t  # nn.Identity default

    orig_lead = x.shape[:-1]
    K = x.shape[-1]
    H = wa.shape[0]
    R = int(math.prod(orig_lead)) if orig_lead else 1
    dtype = x.dtype

    x2 = x.reshape(R, K)
    wa_t = wa.T            # (K, H)
    wg_t = wg.T            # (K, H)

    # Tile sizes: lane-dense (multiples of 128) on the last dims, multiple of 8
    # on the row dim, capped at the requested tiles (sized well under the
    # double-buffered VMEM budget on v5e/v6e/v7x).
    tm = min(tile_m, _round_up(R, 8))
    tn = min(tile_n, _round_up(H, 128))
    tk = min(tile_k, _round_up(K, 128))

    Rp = _round_up(R, tm)
    Hp = _round_up(H, tn)
    Kp = _round_up(K, tk)

    # Zero padding is exact: padded K rows/cols contribute nothing to the dot.
    x_p = jnp.pad(x2, ((0, Rp - R), (0, Kp - K)))
    wa_p = jnp.pad(wa_t, ((0, Kp - K), (0, Hp - H)))
    wg_p = jnp.pad(wg_t, ((0, Kp - K), (0, Hp - H)))
    ba_p = jnp.pad(ba.astype(jnp.float32), (0, Hp - H)).reshape(1, Hp)
    bg_p = jnp.pad(bg.astype(jnp.float32), (0, Hp - H)).reshape(1, Hp)

    grid = (Rp // tm, Hp // tn, Kp // tk)

    out_p, gate_p = pl.pallas_call(
        _make_glu_kernel(activation_fn),
        out_shape=(jax.ShapeDtypeStruct((Rp, Hp), dtype),
                   jax.ShapeDtypeStruct((Rp, Hp), dtype)),
        grid_spec=pltpu.PrefetchScalarGridSpec(
            num_scalar_prefetch=0,
            grid=grid,
            in_specs=[
                pl.BlockSpec((tm, tk), lambda i, j, k: (i, k)),   # x
                pl.BlockSpec((tk, tn), lambda i, j, k: (k, j)),   # Wa^T
                pl.BlockSpec((tk, tn), lambda i, j, k: (k, j)),   # Wg^T
                pl.BlockSpec((1, tn), lambda i, j, k: (0, j)),    # ba
                pl.BlockSpec((1, tn), lambda i, j, k: (0, j)),    # bg
            ],
            out_specs=[
                pl.BlockSpec((tm, tn), lambda i, j, k: (i, j)),   # out
                pl.BlockSpec((tm, tn), lambda i, j, k: (i, j)),   # gate
            ],
            scratch_shapes=[
                pltpu.VMEM((tm, tn), jnp.float32),                # acc for activation branch
                pltpu.VMEM((tm, tn), jnp.float32),                # acc for gate branch
            ],
        ),
        compiler_params=pltpu.CompilerParams(
            dimension_semantics=("parallel", "parallel", "arbitrary")),
    )(x_p, wa_p, wg_p, ba_p, bg_p)

    out = out_p[:R, :H].reshape(*orig_lead, H)
    gate = gate_p[:R, :H].reshape(*orig_lead, H)
    return out, gate


if __name__ == "__main__":
    key = jax.random.PRNGKey(0)
    batch, seq, input_size, hidden = 2, 8, 32, 32

    kx, kwa, kba, kwg, kbg = jax.random.split(key, 5)
    x = jax.random.normal(kx, (batch, seq, input_size), dtype=jnp.float32)
    # nn.Linear-style params (weight: (out, in), bias: (out,))
    wa = jax.random.normal(kwa, (hidden, input_size), dtype=jnp.float32) * 0.1
    ba = jax.random.normal(kba, (hidden,), dtype=jnp.float32) * 0.1
    wg = jax.random.normal(kwg, (hidden, input_size), dtype=jnp.float32) * 0.1
    bg = jax.random.normal(kbg, (hidden,), dtype=jnp.float32) * 0.1

    out, gate = glu_forward(x, wa, ba, wg, bg)
    out, gate = jax.block_until_ready((out, gate))

    # Plain-JAX reference (same math as the torch module with Identity activation,
    # no dropout).
    a_ref = jnp.einsum("bsk,hk->bsh", x, wa) + ba
    g_ref = jax.nn.sigmoid(jnp.einsum("bsk,hk->bsh", x, wg) + bg)
    o_ref = a_ref * g_ref

    assert jnp.allclose(gate, g_ref, atol=1e-5, rtol=1e-5), "gate mismatch vs reference"
    assert jnp.allclose(out, o_ref, atol=1e-5, rtol=1e-5), "output mismatch vs reference"

    print("KERNEL_OK")
</pallas_src>

<mosaic_0001>
module attributes {stable_mosaic.version = 11 : i64} {
  func.func @glu_kernel(%arg0: i32, %arg1: i32, %arg2: i32, %arg3: memref<16x128xf32, #tpu.memory_space<vmem>>, %arg4: memref<128x128xf32, #tpu.memory_space<vmem>>, %arg5: memref<128x128xf32, #tpu.memory_space<vmem>>, %arg6: memref<1x128xf32, #tpu.memory_space<vmem>>, %arg7: memref<1x128xf32, #tpu.memory_space<vmem>>, %arg8: memref<16x128xf32, #tpu.memory_space<vmem>>, %arg9: memref<16x128xf32, #tpu.memory_space<vmem>>, %arg10: memref<16x128xf32, #tpu.memory_space<vmem>>, %arg11: memref<16x128xf32, #tpu.memory_space<vmem>>) attributes {dimension_semantics = [#tpu.dimension_semantics<parallel>, #tpu.dimension_semantics<parallel>, #tpu.dimension_semantics<arbitrary>], iteration_bounds = array<i64: 1, 1, 1>, scalar_prefetch = 0 : i64, scratch_operands = 2 : i64, tpu.core_type = #tpu.core_type<tc>, window_params = [{transform_indices = @transform_0, window_bounds = array<i64: 16, 128>}, {transform_indices = @transform_1, window_bounds = array<i64: 128, 128>}, {transform_indices = @transform_2, window_bounds = array<i64: 128, 128>}, {transform_indices = @transform_3, window_bounds = array<i64: 1, 128>}, {transform_indices = @transform_4, window_bounds = array<i64: 1, 128>}, {transform_indices = @transform_5, window_bounds = array<i64: 16, 128>}, {transform_indices = @transform_6, window_bounds = array<i64: 16, 128>}]} {
    %c0_i32 = arith.constant 0 : i32
    %0 = arith.cmpi eq, %arg2, %c0_i32 : i32
    %1 = arith.extui %0 : i1 to i32
    %c0_i32_0 = arith.constant 0 : i32
    %2 = arith.cmpi ne, %1, %c0_i32_0 : i32
    scf.if %2 {
      %cst_17 = arith.constant 0.000000e+00 : f32
      %17 = vector.broadcast %cst_17 : f32 to vector<16x128xf32>
      %c0_18 = arith.constant 0 : index
      %c0_19 = arith.constant 0 : index
      %18 = vector.load %arg10[%c0_18, %c0_19] : memref<16x128xf32, #tpu.memory_space<vmem>>, vector<16x128xf32>
      tpu.vector_store %arg10[%c0_18, %c0_19], %17 {strides = array<i32>} : memref<16x128xf32, #tpu.memory_space<vmem>>, vector<16x128xf32>,
      %cst_20 = arith.constant 0.000000e+00 : f32
      %19 = vector.broadcast %cst_20 : f32 to vector<16x128xf32>
      %c0_21 = arith.constant 0 : index
      %c0_22 = arith.constant 0 : index
      %20 = vector.load %arg11[%c0_21, %c0_22] : memref<16x128xf32, #tpu.memory_space<vmem>>, vector<16x128xf32>
      tpu.vector_store %arg11[%c0_21, %c0_22], %19 {strides = array<i32>} : memref<16x128xf32, #tpu.memory_space<vmem>>, vector<16x128xf32>,
    } else {
    }
    %c0 = arith.constant 0 : index
    %c0_1 = arith.constant 0 : index
    %3 = vector.load %arg3[%c0, %c0_1] : memref<16x128xf32, #tpu.memory_space<vmem>>, vector<16x128xf32>
    %c0_2 = arith.constant 0 : index
    %c0_3 = arith.constant 0 : index
    %4 = vector.load %arg10[%c0_2, %c0_3] : memref<16x128xf32, #tpu.memory_space<vmem>>, vector<16x128xf32>
    %c0_4 = arith.constant 0 : index
    %c0_5 = arith.constant 0 : index
    %5 = vector.load %arg4[%c0_4, %c0_5] : memref<128x128xf32, #tpu.memory_space<vmem>>, vector<128x128xf32>
    %cst = arith.constant dense<0.000000e+00> : vector<16x128xf32>
    %6 = tpu.matmul %3, %5, %cst {dimension_numbers = #tpu.dot_dimension_numbers<[1], [0], [0], [1], [0, 0, 1, 1], [], []>} : vector<16x128xf32>, vector<128x128xf32>, vector<16x128xf32> -> vector<16x128xf32>
    %7 = arith.addf %4, %6 : vector<16x128xf32>
    %c0_6 = arith.constant 0 : index
    %c0_7 = arith.constant 0 : index
    %8 = vector.load %arg10[%c0_6, %c0_7] : memref<16x128xf32, #tpu.memory_space<vmem>>, vector<16x128xf32>
    tpu.vector_store %arg10[%c0_6, %c0_7], %7 {strides = array<i32>} : memref<16x128xf32, #tpu.memory_space<vmem>>, vector<16x128xf32>,
    %c0_8 = arith.constant 0 : index
    %c0_9 = arith.constant 0 : index
    %9 = vector.load %arg11[%c0_8, %c0_9] : memref<16x128xf32, #tpu.memory_space<vmem>>, vector<16x128xf32>
    %c0_10 = arith.constant 0 : index
    %c0_11 = arith.constant 0 : index
    %10 = vector.load %arg5[%c0_10, %c0_11] : memref<128x128xf32, #tpu.memory_space<vmem>>, vector<128x128xf32>
    %cst_12 = arith.constant dense<0.000000e+00> : vector<16x128xf32>
    %11 = tpu.matmul %3, %10, %cst_12 {dimension_numbers = #tpu.dot_dimension_numbers<[1], [0], [0], [1], [0, 0, 1, 1], [], []>} : vector<16x128xf32>, vector<128x128xf32>, vector<16x128xf32> -> vector<16x128xf32>
    %12 = arith.addf %9, %11 : vector<16x128xf32>
    %c0_13 = arith.constant 0 : index
    %c0_14 = arith.constant 0 : index
    %13 = vector.load %arg11[%c0_13, %c0_14] : memref<16x128xf32, #tpu.memory_space<vmem>>, vector<16x128xf32>
    tpu.vector_store %arg11[%c0_13, %c0_14], %12 {strides = array<i32>} : memref<16x128xf32, #tpu.memory_space<vmem>>, vector<16x128xf32>,
    %c0_i32_15 = arith.constant 0 : i32
    %14 = arith.cmpi eq, %arg2, %c0_i32_15 : i32
    %15 = arith.extui %14 : i1 to i32
    %c0_i32_16 = arith.constant 0 : i32
    %16 = arith.cmpi ne, %15, %c0_i32_16 : i32
    scf.if %16 {
      %c0_17 = arith.constant 0 : index
      %c0_18 = arith.constant 0 : index
      %17 = vector.load %arg10[%c0_17, %c0_18] : memref<16x128xf32, #tpu.memory_space<vmem>>, vector<16x128xf32>
      %c0_19 = arith.constant 0 : index
      %c0_20 = arith.constant 0 : index
      %18 = vector.load %arg6[%c0_19, %c0_20] : memref<1x128xf32, #tpu.memory_space<vmem>>, vector<1x128xf32>
      %19 = vector.broadcast %18 : vector<1x128xf32> to vector<16x128xf32>
      %20 = arith.addf %17, %19 : vector<16x128xf32>
      %c0_21 = arith.constant 0 : index
      %c0_22 = arith.constant 0 : index
      %21 = vector.load %arg11[%c0_21, %c0_22] : memref<16x128xf32, #tpu.memory_space<vmem>>, vector<16x128xf32>
      %c0_23 = arith.constant 0 : index
      %c0_24 = arith.constant 0 : index
      %22 = vector.load %arg7[%c0_23, %c0_24] : memref<1x128xf32, #tpu.memory_space<vmem>>, vector<1x128xf32>
      %23 = vector.broadcast %22 : vector<1x128xf32> to vector<16x128xf32>
      %24 = arith.addf %21, %23 : vector<16x128xf32>
      %25 = arith.negf %24 : vector<16x128xf32>
      %26 = math.exp %25 : vector<16x128xf32>
      %cst_25 = arith.constant 1.000000e+00 : f32
      %27 = vector.broadcast %cst_25 : f32 to vector<16x128xf32>
      %28 = arith.addf %27, %26 : vector<16x128xf32>
      %29 = arith.divf %27, %28 : vector<16x128xf32>
      %c0_26 = arith.constant 0 : index
      %c0_27 = arith.constant 0 : index
      %30 = vector.load %arg9[%c0_26, %c0_27] : memref<16x128xf32, #tpu.memory_space<vmem>>, vector<16x128xf32>
      tpu.vector_store %arg9[%c0_26, %c0_27], %29 {strides = array<i32>} : memref<16x128xf32, #tpu.memory_space<vmem>>, vector<16x128xf32>,
      %31 = arith.mulf %20, %29 : vector<16x128xf32>
      %c0_28 = arith.constant 0 : index
      %c0_29 = arith.constant 0 : index
      %32 = vector.load %arg8[%c0_28, %c0_29] : memref<16x128xf32, #tpu.memory_space<vmem>>, vector<16x128xf32>
      tpu.vector_store %arg8[%c0_28, %c0_29], %31 {strides = array<i32>} : memref<16x128xf32, #tpu.memory_space<vmem>>, vector<16x128xf32>,
    } else {
    }
    return
  }
  func.func @transform_0(%arg0: i32, %arg1: i32, %arg2: i32) -> (i32, i32) {
    %c0_i32 = arith.constant 0 : i32
    return %arg0, %arg2 : i32, i32
  }
  func.func @transform_1(%arg0: i32, %arg1: i32, %arg2: i32) -> (i32, i32) {
    %c0_i32 = arith.constant 0 : i32
    return %arg2, %arg1 : i32, i32
  }
  func.func @transform_2(%arg0: i32, %arg1: i32, %arg2: i32) -> (i32, i32) {
    %c0_i32 = arith.constant 0 : i32
    return %arg2, %arg1 : i32, i32
  }
  func.func @transform_3(%arg0: i32, %arg1: i32, %arg2: i32) -> (i32, i32) {
    %c0_i32 = arith.constant 0 : i32
    %c0_i32_0 = arith.constant 0 : i32
    return %c0_i32, %arg1 : i32, i32
  }
  func.func @transform_4(%arg0: i32, %arg1: i32, %arg2: i32) -> (i32, i32) {
    %c0_i32 = arith.constant 0 : i32
    %c0_i32_0 = arith.constant 0 : i32
    return %c0_i32, %arg1 : i32, i32
  }
  func.func @transform_5(%arg0: i32, %arg1: i32, %arg2: i32) -> (i32, i32) {
    %c0_i32 = arith.constant 0 : i32
    return %arg0, %arg1 : i32, i32
  }
  func.func @transform_6(%arg0: i32, %arg1: i32, %arg2: i32) -> (i32, i32) {
    %c0_i32 = arith.constant 0 : i32
    return %arg0, %arg1 : i32, i32
  }
}

</mosaic_0001>

<bundles_post_ra>
// kernel: tpu_custom_call.1
= control target key start
LH: loop header
LB: loop body
LE: loop exit
PB: predicated region body
PF: predicated region fallthrough
CT: control target
= control target key end

     0   :  { %12 = vsyncpa [#allocation5], 0  ;;  %s529_s0 = inlined_call_operand.hbm [shape: f32[16,128], index: 0, kind: input, shape index: {}]   ;;  %s530_s1 = inlined_call_operand.hbm [shape: f32[128,128], index: 1, kind: input, shape index: {}]   ;;  %s531_s2 = inlined_call_operand.hbm [shape: f32[128,128], index: 2, kind: input, shape index: {}]   ;;  %s532_s3 = inlined_call_operand.vmem [shape: f32[1,128], index: 3, kind: input, shape index: {}]   ;;  %s533_s4 = inlined_call_operand.vmem [shape: f32[1,128], index: 4, kind: input, shape index: {}]   ;;  %s534_s5 = inlined_call_operand.hbm [shape: f32[16,128], index: 5, kind: output, shape index: {0}]   ;;  %s535_s6 = inlined_call_operand.hbm [shape: f32[16,128], index: 6, kind: output, shape index: {1}]  }
   0x1   :  { %13 = vsyncpa [#allocation8], 0 }
   0x2   :  { %14 = vsyncpa [#allocation6], 0 }
   0x3   :  { %15 = vsyncpa [#allocation12], 0  ;;  %s33_s23 = sshll.u32 %s530_s1, 4  ;;  %s451_s24 = smov [#allocation7]   ;;  %s34_s23 = int_to_ptr.hbm [resolvable:$true] %s33_s23 }
   0x4   :  { %s35_s25 = sshll.u32 %s451_s24, 4  ;;  %s20_s28 = sshll.u32 %s529_s0, 4  ;;  %s36_s25 = int_to_ptr.vmem [resolvable:$true] %s35_s25  ;;  %s21_s28 = int_to_ptr.hbm [resolvable:$true] %s20_s28 }
   0x5   :  { %s452_s29 = smov 128   ;;  %s453_s30 = smov 8  }
   0x6   :  { %41 = dma.hbm_to_vmem [thread:$0]  %s34_s23, 2048, %s36_s25, [#allocation8], %s452_s29, %s452_s29, %s453_s30  }
   0x7   :  { %s454_s7 = smov [#allocation4]   ;;  %s46_s1 = sshll.u32 %s531_s2, 4  ;;  %s47_s1 = int_to_ptr.hbm [resolvable:$true] %s46_s1 }
   0x8   :  { %s22_s8 = sshll.u32 %s454_s7, 4  ;;  %s455_s0 = smov [#allocation9]   ;;  %s23_s8 = int_to_ptr.vmem [resolvable:$true] %s22_s8 }
   0x9   :  { %28 = dma.hbm_to_vmem [thread:$0]  %s21_s28, 256, %s23_s8, [#allocation5], %s452_s29, %s452_s29, %s453_s30  }
   0xa   :  { %s48_s11 = sshll.u32 %s455_s0, 4  ;;  %s49_s11 = int_to_ptr.vmem [resolvable:$true] %s48_s11 }
   0xb   :  { %54 = dma.hbm_to_vmem [thread:$0]  %s47_s1, 2048, %s49_s11, [#allocation8], %s452_s29, %s452_s29, %s453_s30  }
   0xc   :  { %443 = dma.done.wait [#allocation5], 256  }
   0xd   :  { %444 = vsyncadd [#allocation5], 4294967040 }
   0xe   :  { %445 = dma.done.wait [#allocation8], 4096  }
   0xf   :  { %446 = vsyncadd [#allocation8], 4294963200  ;;  %v143_v0 = vld [vmem:[#allocation9 + $0x78] sm:$0xff]  ;;  %v142_v1 = vld [vmem:[#allocation9 + $0x70] sm:$0xff]  ;;  %s253_s17 = sshll.u32 %s535_s6, 4  ;;  %s457_s18 = smov [#allocation10]   ;;  %s254_s17 = int_to_ptr.hbm [resolvable:$true] %s253_s17 }
  0x10   :  { %144 = vmatpush.msra.mxu1 %v143_v0  ;;  %290 = vmatpush.msra.mxu3 %v143_v0  ;;  %v141_v2 = vld [vmem:[#allocation9 + $0x68] sm:$0xff]  ;;  %v140_v3 = vld [vmem:[#allocation9 + $0x60] sm:$0xff]  ;;  %v98_v4 = vld [vmem:[#allocation7 + $0x78] sm:$0xff]  ;;  %s238_s19 = sshll.u32 %s457_s18, 4  ;;  %s240_s22 = sshll.u32 %s534_s5, 4  ;;  %s239_s19 = int_to_ptr.vmem [resolvable:$true] %s238_s19  ;;  %s241_s22 = int_to_ptr.hbm [resolvable:$true] %s240_s22 }
  0x11   :  { %v97_v5 = vld [vmem:[#allocation7 + $0x70] sm:$0xff]  ;;  %v139_v6 = vld [vmem:[#allocation9 + $0x58] sm:$0xff]  ;;  %99 = vmatpush.msra.mxu0 %v98_v4  ;;  %274 = vmatpush.msra.mxu2 %v98_v4  ;;  %v96_v7 = vld [vmem:[#allocation7 + $0x68] sm:$0xff] }
  0x12   :  { %145 = vmatpush.msra.mxu1 %v142_v1  ;;  %291 = vmatpush.msra.mxu3 %v142_v1  ;;  %v138_v8 = vld [vmem:[#allocation9 + $0x50] sm:$0xff]  ;;  %v95_v9 = vld [vmem:[#allocation7 + $0x60] sm:$0xff]  ;;  %v137_v10 = vld [vmem:[#allocation9 + $0x48] sm:$0xff] }
  0x13   :  { %100 = vmatpush.msra.mxu0 %v97_v5  ;;  %275 = vmatpush.msra.mxu2 %v97_v5  ;;  %v94_v11 = vld [vmem:[#allocation7 + $0x58] sm:$0xff]  ;;  %v136_v12 = vld [vmem:[#allocation9 + $0x40] sm:$0xff]  ;;  %v93_v13 = vld [vmem:[#allocation7 + $0x50] sm:$0xff] }
  0x14   :  { %146 = vmatpush.msra.mxu1 %v141_v2  ;;  %292 = vmatpush.msra.mxu3 %v141_v2  ;;  %v135_v14 = vld [vmem:[#allocation9 + $0x38] sm:$0xff]  ;;  %v92_v15 = vld [vmem:[#allocation7 + $0x48] sm:$0xff]  ;;  %v134_v16 = vld [vmem:[#allocation9 + $0x30] sm:$0xff] }
  0x15   :  { %101 = vmatpush.msra.mxu0 %v96_v7  ;;  %276 = vmatpush.msra.mxu2 %v96_v7  ;;  %v91_v17 = vld [vmem:[#allocation7 + $0x40] sm:$0xff]  ;;  %v133_v18 = vld [vmem:[#allocation9 + $0x28] sm:$0xff]  ;;  %v90_v19 = vld [vmem:[#allocation7 + $0x38] sm:$0xff] }
  0x16   :  { %147 = vmatpush.msra.mxu1 %v140_v3  ;;  %293 = vmatpush.msra.mxu3 %v140_v3  ;;  %v132_v20 = vld [vmem:[#allocation9 + $0x20] sm:$0xff]  ;;  %v89_v21 = vld [vmem:[#allocation7 + $0x30] sm:$0xff]  ;;  %v131_v22 = vld [vmem:[#allocation9 + $0x18] sm:$0xff] }
  0x17   :  { %102 = vmatpush.msra.mxu0 %v95_v9  ;;  %277 = vmatpush.msra.mxu2 %v95_v9  ;;  %v88_v23 = vld [vmem:[#allocation7 + $0x28] sm:$0xff]  ;;  %v130_v24 = vld [vmem:[#allocation9 + $0x10] sm:$0xff]  ;;  %v87_v25 = vld [vmem:[#allocation7 + $0x20] sm:$0xff] }
  0x18   :  { %148 = vmatpush.msra.mxu1 %v139_v6  ;;  %294 = vmatpush.msra.mxu3 %v139_v6  ;;  %v129_v26 = vld [vmem:[#allocation9 + $0x8] sm:$0xff]  ;;  %v86_v27 = vld [vmem:[#allocation7 + $0x18] sm:$0xff]  ;;  %v128_v28 = vld [vmem:[#allocation9] sm:$0xff] }
  0x19   :  { %103 = vmatpush.msra.mxu0 %v94_v11  ;;  %278 = vmatpush.msra.mxu2 %v94_v11  ;;  %v79_v29 = vld [vmem:[#allocation4] sm:$0xff]  ;;  %v80_v30 = vld [vmem:[#allocation4 + $0x8] sm:$0xff]  ;;  %v84_v32 = vld [vmem:[#allocation7 + $0x8] sm:$0xff] }
  0x1a   :  { %149 = vmatpush.msra.mxu1 %v138_v8  ;;  %295 = vmatpush.msra.mxu3 %v138_v8  ;;  %v85_v31 = vld [vmem:[#allocation7 + $0x10] sm:$0xff]  ;;  %v83_v33 = vld [vmem:[#allocation7] sm:$0xff] }
  0x1b   :  { %104 = vmatpush.msra.mxu0 %v93_v13  ;;  %279 = vmatpush.msra.mxu2 %v93_v13  ;;  %v313_v34 = vld [vmem:[%s533_s4] ss:$0 sm:$0xff] }
  0x1c   :  { %150 = vmatpush.msra.mxu1 %v137_v10  ;;  %296 = vmatpush.msra.mxu3 %v137_v10  ;;  %v314_v47 = vld [vmem:[%s532_s3] ss:$0 sm:$0xff]  ;;  %s456_s3 = smov [#allocation11]  }
  0x1d   :  { %105 = vmatpush.msra.mxu0 %v92_v15  ;;  %280 = vmatpush.msra.mxu2 %v92_v15  ;;  %s251_s4 = sshll.u32 %s456_s3, 4  ;;  %s252_s4 = int_to_ptr.vmem [resolvable:$true] %s251_s4 }
  0x1e   :  { %151 = vmatpush.msra.mxu1 %v136_v12  ;;  %297 = vmatpush.msra.mxu3 %v136_v12 }
  0x1f   :  { %106 = vmatpush.msra.mxu0 %v91_v17  ;;  %281 = vmatpush.msra.mxu2 %v91_v17 }
  0x20   :  { %152 = vmatpush.msra.mxu1 %v135_v14  ;;  %298 = vmatpush.msra.mxu3 %v135_v14 }
  0x21   :  { %107 = vmatpush.msra.mxu0 %v90_v19  ;;  %282 = vmatpush.msra.mxu2 %v90_v19 }
  0x22   :  { %153 = vmatpush.msra.mxu1 %v134_v16  ;;  %299 = vmatpush.msra.mxu3 %v134_v16 }
  0x23   :  { %108 = vmatpush.msra.mxu0 %v89_v21  ;;  %283 = vmatpush.msra.mxu2 %v89_v21 }
  0x24   :  { %154 = vmatpush.msra.mxu1 %v133_v18  ;;  %300 = vmatpush.msra.mxu3 %v133_v18 }
  0x25   :  { %109 = vmatpush.msra.mxu0 %v88_v23  ;;  %284 = vmatpush.msra.mxu2 %v88_v23 }
  0x26   :  { %155 = vmatpush.msra.mxu1 %v132_v20  ;;  %301 = vmatpush.msra.mxu3 %v132_v20 }
  0x27   :  { %110 = vmatpush.msra.mxu0 %v87_v25  ;;  %285 = vmatpush.msra.mxu2 %v87_v25 }
  0x28   :  { %156 = vmatpush.msra.mxu1 %v131_v22  ;;  %302 = vmatpush.msra.mxu3 %v131_v22 }
  0x29   :  { %111 = vmatpush.msra.mxu0 %v86_v27  ;;  %286 = vmatpush.msra.mxu2 %v86_v27 }
  0x2a   :  { %157 = vmatpush.msra.mxu1 %v130_v24  ;;  %303 = vmatpush.msra.mxu3 %v130_v24 }
  0x2b   :  { %112 = vmatpush.msra.mxu0 %v85_v31  ;;  %287 = vmatpush.msra.mxu2 %v85_v31 }
  0x2c   :  { %158 = vmatpush.msra.mxu1 %v129_v26  ;;  %304 = vmatpush.msra.mxu3 %v129_v26 }
  0x2d   :  { %113 = vmatpush.msra.mxu0 %v84_v32  ;;  %288 = vmatpush.msra.mxu2 %v84_v32 }
  0x2e   :  { %159 = vmatpush.msra.mxu1 %v128_v28  ;;  %305 = vmatpush.msra.mxu3 %v128_v28 }
  0x2f   :  { %160 = vmatmul.f32.vlgmr.msra.gmra.mxu1 %v79_v29  ;;  %163 = vmatmul.f32.vlgmr.msra.gmra.mxu3 %v80_v30 }
  0x30   :  { %114 = vmatpush.msra.mxu0 %v83_v33  ;;  %289 = vmatpush.msra.mxu2 %v83_v33 }
  0x31   :  { %115 = vmatmul.f32.vlgmr.msra.gmra.mxu0 %v79_v29  ;;  %118 = vmatmul.f32.vlgmr.msra.gmra.mxu2 %v80_v30 }
  0xac   :  { %v161_v35 = vpop.f32.mrf.mxu1 }
  0xad   :  { %v188_v36 = vadd.f32 %v313_v34, %v161_v35 }
  0xae   :  { %v116_v49 = vpop.f32.mrf.mxu0 }
  0xaf   :  { %v272_v37 = vmul.f32 -1.442695, %v188_v36  ;;  %v180_v54 = vadd.f32 %v314_v47, %v116_v49 }
  0xb1   :  { %315 = vpow2.f32 %v272_v37 }
  0xb2   :  { %v164_v38 = vpop.f32.mrf.mxu3 }
  0xb3   :  { %v189_v39 = vadd.f32 %v313_v34, %v164_v38 }
  0xb4   :  { %v119_v61 = vpop.f32.mrf.mxu2 }
  0xb5   :  { %v273_v40 = vmul.f32 -1.442695, %v189_v39  ;;  %v181_v2 = vadd.f32 %v314_v47, %v119_v61 }
  0xb7   :  { %v316_v41 = vpop.eup %315  ;;  %317 = vpow2.f32 %v273_v40 }
  0xb8   :  { %v196_v42 = vadd.f32 1.0, %v316_v41 }
  0xba   :  { %319 = vrcp.f32 %v196_v42  ;;  %v209_v50 = vand.u32 2147483648, %v196_v42  ;;  %vm203_vm0 = vweird.f32 %v196_v42  ;;  %v207_v52 = vand.u32 2147483647, %v196_v42 }
  0xbc   :  { %v210_v57 = vor.u32 1.1754944e-38, %v209_v50  ;;  %vm208_vm3 = vcmp.eq.f32.partialorder %v207_v52, 8.507059e+37 }
  0xbd   :  { %v318_v43 = vpop.eup %317 }
  0xbe   :  { %v197_v44 = vadd.f32 1.0, %v318_v43 }
  0xc0   :  { %v320_v45 = vpop.eup %319  ;;  %321 = vrcp.f32 %v197_v44  ;;  %v224_v62 = vand.u32 2147483648, %v197_v44  ;;  %v222_v1 = vand.u32 2147483647, %v197_v44  ;;  %vm218_vm5 = vweird.f32 %v197_v44 }
  0xc1   :  { %v199_v46 = vmul.f32 %v320_v45, %v196_v42  ;;  %vm204_vm1 = vweird.f32 %v320_v45 }
  0xc2   :  { %vm205_vm2 = vmor %vm203_vm0, %vm204_vm1  ;;  %v225_v4 = vor.u32 1.1754944e-38, %v224_v62  ;;  %vm223_vm7 = vcmp.eq.f32.partialorder %v222_v1, 8.507059e+37 }
  0xc3   :  { %v200_v48 = vsub.f32 1.0, %v199_v46 }
  0xc5   :  { %v201_v51 = vmul.f32 %v320_v45, %v200_v48 }
  0xc6   :  { %v322_v53 = vpop.eup %321 }
  0xc7   :  { %v202_v55 = vadd.f32 %v320_v45, %v201_v51  ;;  %v214_v56 = vmul.f32 %v322_v53, %v197_v44  ;;  %vm219_vm4 = vweird.f32 %v322_v53 }
  0xc8   :  { %vm220_vm6 = vmor %vm218_vm5, %vm219_vm4 }
  0xc9   :  { %v206_v58 = vsel %vm205_vm2, %v320_v45, %v202_v55  ;;  %v215_v59 = vsub.f32 1.0, %v214_v56 }
  0xca   :  { %v211_v60 = vsel %vm208_vm3, %v210_v57, %v206_v58 }
  0xcb   :  { %228 = vst [vmem:[#allocation11] sm:$0xff] %v211_v60  ;;  %v230_v63 = vmul.f32 %v211_v60, %v180_v54  ;;  %v216_v0 = vmul.f32 %v322_v53, %v215_v59 }
  0xcd   :  { %232 = vst [vmem:[#allocation10] sm:$0xff] %v230_v63  ;;  %v217_v3 = vadd.f32 %v322_v53, %v216_v0 }
  0xcf   :  { %v221_v5 = vsel %vm220_vm6, %v322_v53, %v217_v3 }
  0xd0   :  { %v226_v6 = vsel %vm223_vm7, %v225_v4, %v221_v5 }
  0xd1   :  { %229 = vst [vmem:[#allocation11 + $0x8] sm:$0xff] %v226_v6  ;;  %v231_v7 = vmul.f32 %v226_v6, %v181_v2 }
  0xd2   :  { %259 = dma.vmem_to_hbm [thread:$0]  %s252_s4, 256, %s254_s17, [#allocation12], %s452_s29, %s452_s29, %s453_s30  }
  0xd3   :  { %233 = vst [vmem:[#allocation10 + $0x8] sm:$0xff] %v231_v7 }
  0xd4   :  { %246 = dma.vmem_to_hbm [thread:$0]  %s239_s19, 256, %s241_s22, [#allocation6], %s452_s29, %s452_s29, %s453_s30  }
  0xd5   :  { %447 = dma.done.wait [#allocation6], 256  }
  0xd6   :  { %448 = vsyncadd [#allocation6], 4294967040 }
  0xd7   :  { %449 = dma.done.wait [#allocation12], 256  }
  0xd8   :  { %450 = vsyncadd [#allocation12], 4294967040 }
  0xd9   :  { %268 = vsyncpa [#allocation5], 1 }
  0xda   :  { %269 = vsyncpa [#allocation8], 1 }
  0xdb   :  { %270 = vsyncpa [#allocation6], 1 }
  0xdc   :  { %271 = vsyncpa [#allocation12], 1 }

</bundles_post_ra>
